<compile_context>
chip_gen: v7x
topology: tpu7x:2x2x1
jax: 0.10.0
libtpu: 0.0.40
codegen_flags: <defaults>
</compile_context>

<pallas_src>
import functools
import math

import jax
import jax.numpy as jnp
from jax import lax
from jax.experimental import pallas as pl
from jax.experimental.pallas import tpu as pltpu

_MIB = 1024 * 1024


def _label_smoothing_kernel(x_ref, tgt_ref, *out_refs,
                            confidence, base, padding_idx, v_orig,
                            row_const, with_true_dist):
    if with_true_dist:
        td_ref, part_ref = out_refs
    else:
        part_ref = out_refs[0]

    x = x_ref[...].astype(jnp.float32)            # (tm, Vp) log-probabilities
    tgt = tgt_ref[...]                            # (tm, 1) int32 target ids
    tm, vp = x.shape

    col = lax.broadcasted_iota(jnp.int32, (tm, vp), 1)
    row_valid = tgt != padding_idx                # (tm, 1)

    # Same op order as torch: fill -> scatter confidence -> zero padding col
    # -> zero padded rows.  Lane-padded columns (col >= v_orig) are forced to 0.
    td = jnp.where(col == tgt, confidence, base)
    td = jnp.where(col == padding_idx, 0.0, td)
    if vp != v_orig:
        td = jnp.where(col < v_orig, td, 0.0)
    td = jnp.where(row_valid, td, 0.0)
    td = td.astype(jnp.float32)

    if with_true_dist:
        td_ref[...] = td.astype(td_ref.dtype)

    # KLDiv(sum) = sum(td*log(td)) - sum(td*x) = n_valid * row_const - sum(td*x)
    n_valid = jnp.sum(row_valid.astype(jnp.float32))
    tile_loss = n_valid * row_const - jnp.sum(td * x)

    # Lane-dense (8,128) partial block; only entry [0,0] carries the value.
    sub = lax.broadcasted_iota(jnp.int32, part_ref.shape, 0)
    lane = lax.broadcasted_iota(jnp.int32, part_ref.shape, 1)
    part_ref[...] = jnp.where((sub == 0) & (lane == 0), tile_loss, 0.0).astype(
        part_ref.dtype)


def _vmem_capacity_bytes():
    try:
        return int(pltpu.get_tpu_info().vmem_capacity_bytes)
    except Exception:
        return 64 * _MIB   # conservative fallback (v7x per-core VMEM)


@functools.partial(jax.jit, static_argnames=("padding_idx", "smoothing", "tm",
                                             "with_true_dist"))
def label_smoothing(x, target, *, padding_idx, smoothing, tm=256,
                    with_true_dist=True):
    """x: (N, V) log-probs, target: (N,) int.

    Returns (loss, true_dist) if with_true_dist else loss.
    """
    N, V = x.shape
    confidence = 1.0 - float(smoothing)
    base = float(smoothing) / (V - 2)

    # Compile-time constant: sum(td * log(td)) over one valid row.
    row_const = 0.0
    if confidence > 0.0:
        row_const += confidence * math.log(confidence)
    if base > 0.0:
        row_const += (V - 2) * base * math.log(base)

    # Lane-pad the vocab axis so x loads and td stores are full-lane.
    Vp = ((V + 127) // 128) * 128
    if Vp != V:
        x = jnp.pad(x, ((0, 0), (0, Vp - V)))

    # Generation-aware VMEM budget: ~80% of physical, minus headroom for
    # compiler internal scratch and the small target/partial buffers.
    capacity = _vmem_capacity_bytes()
    budget = max(16 * _MIB, min(capacity - 16 * _MIB, int(capacity * 0.8)))
    factor = 6 if with_true_dist else 4   # double-buffered x (+ td) + slack
    bytes_per_row = factor * Vp * 4
    max_rows_by_vmem = max(8, ((budget // bytes_per_row) // 8) * 8)
    tm = min(int(tm), max_rows_by_vmem, max(8, ((N + 7) // 8) * 8))

    Mpad = ((N + tm - 1) // tm) * tm
    if Mpad != N:
        # Padded rows use target == padding_idx -> zero td row -> zero loss.
        x = jnp.pad(x, ((0, Mpad - N), (0, 0)))
        target = jnp.pad(target, (0, Mpad - N), constant_values=padding_idx)

    tgt2d = target.astype(jnp.int32).reshape(Mpad, 1)
    n_tiles = Mpad // tm

    kernel = functools.partial(
        _label_smoothing_kernel,
        confidence=confidence, base=base, padding_idx=int(padding_idx),
        v_orig=V, row_const=row_const, with_true_dist=with_true_dist)

    out_shape = []
    out_specs = []
    if with_true_dist:
        out_shape.append(jax.ShapeDtypeStruct((Mpad, Vp), x.dtype))
        out_specs.append(pl.BlockSpec((tm, Vp), lambda i: (i, 0)))
    out_shape.append(jax.ShapeDtypeStruct((8 * n_tiles, 128), jnp.float32))
    out_specs.append(pl.BlockSpec((8, 128), lambda i: (i, 0)))

    vmem_bytes = min(capacity, max(32 * _MIB, factor * tm * Vp * 4 + 2 * _MIB))

    outs = pl.pallas_call(
        kernel,
        out_shape=tuple(out_shape),
        grid_spec=pltpu.PrefetchScalarGridSpec(
            num_scalar_prefetch=0,
            grid=(n_tiles,),
            in_specs=[
                pl.BlockSpec((tm, Vp), lambda i: (i, 0)),   # x row tile (lane-dense)
                pl.BlockSpec((tm, 1), lambda i: (i, 0)),    # per-row target ids
            ],
            out_specs=tuple(out_specs),
        ),
        compiler_params=pltpu.CompilerParams(
            # Every grid step writes distinct output blocks -> fully parallel
            # (lets Mosaic shard row tiles across both TensorCores on v7x).
            dimension_semantics=("parallel",),
            vmem_limit_bytes=int(vmem_bytes),
        ),
    )(x, tgt2d)

    if with_true_dist:
        td, partials = outs
        return jnp.sum(partials), td[:N, :V]
    partials = outs[0] if isinstance(outs, (tuple, list)) else outs
    return jnp.sum(partials)


def _reference(x, target, padding_idx, smoothing):
    N, V = x.shape
    confidence = 1.0 - smoothing
    td = jnp.full((N, V), smoothing / (V - 2), dtype=jnp.float32)
    td = td.at[jnp.arange(N), target].set(confidence)
    td = td.at[:, padding_idx].set(0.0)
    td = jnp.where((target == padding_idx)[:, None], 0.0, td)
    loss = jnp.sum(jnp.where(td > 0, td * (jnp.log(jnp.maximum(td, 1e-30)) - x), 0.0))
    return loss, td


if __name__ == "__main__":
    padding_idx = 0
    smoothing = 0.1
    key = jax.random.PRNGKey(0)

    # Case 1: lane-aligned vocab (V multiple of 128).
    N, V = 16, 128
    k_logits, k_tgt, k2_logits, k2_tgt = jax.random.split(key, 4)
    logits = jax.random.normal(k_logits, (N, V), dtype=jnp.float32)
    x = jax.nn.log_softmax(logits, axis=-1)               # KLDivLoss expects log-probs
    target = jax.random.randint(k_tgt, (N,), 1, V, dtype=jnp.int32)
    target = target.at[3].set(padding_idx)                 # exercise padded-row masking
    target = target.at[11].set(padding_idx)

    loss, true_dist = label_smoothing(
        x, target, padding_idx=padding_idx, smoothing=smoothing)
    loss = jax.block_until_ready(loss)
    true_dist = jax.block_until_ready(true_dist)

    ref_loss, ref_td = _reference(x, target, padding_idx, smoothing)
    assert jnp.allclose(true_dist, ref_td, atol=1e-6, rtol=1e-6), "true_dist mismatch"
    assert jnp.allclose(loss, ref_loss, atol=1e-4, rtol=1e-4), "loss mismatch"

    # Loss-only fast path (skips the true_dist HBM write).
    loss_only = jax.block_until_ready(
        label_smoothing(x, target, padding_idx=padding_idx,
                        smoothing=smoothing, with_true_dist=False))
    assert jnp.allclose(loss_only, ref_loss, atol=1e-4, rtol=1e-4), "loss-only mismatch"

    # Case 2: ragged vocab (V=100) to exercise the lane-padding path.
    N2, V2 = 12, 100
    logits2 = jax.random.normal(k2_logits, (N2, V2), dtype=jnp.float32)
    x2 = jax.nn.log_softmax(logits2, axis=-1)
    target2 = jax.random.randint(k2_tgt, (N2,), 1, V2, dtype=jnp.int32)
    target2 = target2.at[5].set(padding_idx)

    loss2, td2 = label_smoothing(
        x2, target2, padding_idx=padding_idx, smoothing=smoothing)
    loss2 = jax.block_until_ready(loss2)
    td2 = jax.block_until_ready(td2)
    ref_loss2, ref_td2 = _reference(x2, target2, padding_idx, smoothing)
    assert jnp.allclose(td2, ref_td2, atol=1e-6, rtol=1e-6), "ragged true_dist mismatch"
    assert jnp.allclose(loss2, ref_loss2, atol=1e-4, rtol=1e-4), "ragged loss mismatch"

    print("KERNEL_OK")
</pallas_src>

<mosaic_0001>
module attributes {stable_mosaic.version = 11 : i64} {
  func.func @_label_smoothing_kernel(%arg0: i32, %arg1: memref<16x128xf32, #tpu.memory_space<vmem>>, %arg2: memref<16x1xi32, #tpu.memory_space<vmem>>, %arg3: memref<16x128xf32, #tpu.memory_space<vmem>>, %arg4: memref<8x128xf32, #tpu.memory_space<vmem>>) attributes {dimension_semantics = [#tpu.dimension_semantics<parallel>], iteration_bounds = array<i64: 1>, scalar_prefetch = 0 : i64, scratch_operands = 0 : i64, tpu.core_type = #tpu.core_type<tc>, window_params = [{transform_indices = @transform_0, window_bounds = array<i64: 16, 128>}, {transform_indices = @transform_1, window_bounds = array<i64: 16, 1>}, {transform_indices = @transform_2, window_bounds = array<i64: 16, 128>}, {transform_indices = @transform_3, window_bounds = array<i64: 8, 128>}]} {
    %c0 = arith.constant 0 : index
    %c0_0 = arith.constant 0 : index
    %0 = vector.load %arg1[%c0, %c0_0] : memref<16x128xf32, #tpu.memory_space<vmem>>, vector<16x128xf32>
    %c0_1 = arith.constant 0 : index
    %c0_2 = arith.constant 0 : index
    %1 = vector.load %arg2[%c0_1, %c0_2] : memref<16x1xi32, #tpu.memory_space<vmem>>, vector<16x1xi32>
    %2 = tpu.iota {dimensions = array<i32: 1>} : vector<16x128xi32>
    %c0_i32 = arith.constant 0 : i32
    %3 = vector.broadcast %c0_i32 : i32 to vector<16x1xi32>
    %4 = arith.cmpi ne, %1, %3 : vector<16x1xi32>
    %5 = vector.broadcast %1 : vector<16x1xi32> to vector<16x128xi32>
    %6 = arith.cmpi eq, %2, %5 : vector<16x128xi32>
    %cst = arith.constant 0.899999976 : f32
    %cst_3 = arith.constant 7.93650805E-4 : f32
    %7 = vector.broadcast %cst : f32 to vector<16x128xf32>
    %8 = vector.broadcast %cst_3 : f32 to vector<16x128xf32>
    %9 = arith.select %6, %7, %8 : vector<16x128xi1>, vector<16x128xf32>
    %c0_i32_4 = arith.constant 0 : i32
    %10 = vector.broadcast %c0_i32_4 : i32 to vector<16x128xi32>
    %11 = arith.cmpi eq, %2, %10 : vector<16x128xi32>
    %cst_5 = arith.constant 0.000000e+00 : f32
    %12 = vector.broadcast %cst_5 : f32 to vector<16x128xf32>
    %13 = arith.select %11, %12, %9 : vector<16x128xi1>, vector<16x128xf32>
    %cst_6 = arith.constant 0.000000e+00 : f32
    %14 = vector.shape_cast %4 : vector<16x1xi1> to vector<16x1xi1>
    %15 = vector.broadcast %14 : vector<16x1xi1> to vector<16x128xi1>
    %16 = vector.broadcast %cst_6 : f32 to vector<16x128xf32>
    %17 = arith.select %15, %13, %16 : vector<16x128xi1>, vector<16x128xf32>
    %c0_7 = arith.constant 0 : index
    %c0_8 = arith.constant 0 : index
    %18 = vector.load %arg3[%c0_7, %c0_8] : memref<16x128xf32, #tpu.memory_space<vmem>>, vector<16x128xf32>
    tpu.vector_store %arg3[%c0_7, %c0_8], %17 {strides = array<i32>} : memref<16x128xf32, #tpu.memory_space<vmem>>, vector<16x128xf32>,
    %19 = arith.extui %4 : vector<16x1xi1> to vector<16x1xi32>
    %20 = arith.sitofp %19 : vector<16x1xi32> to vector<16x1xf32>
    %21 = vector.shape_cast %20 : vector<16x1xf32> to vector<1x16x1xf32>
    %cst_9 = arith.constant dense<0.000000e+00> : vector<1xf32>
    %22 = vector.multi_reduction <add>, %21, %cst_9 [1, 2] : vector<1x16x1xf32> to vector<1xf32>
    %23 = vector.shape_cast %22 : vector<1xf32> to vector<1x1x1xf32>
    %24 = vector.extract %23[0, 0, 0] : f32 from vector<1x1x1xf32>
    %cst_10 = arith.constant -0.808711171 : f32
    %25 = arith.mulf %24, %cst_10 : f32
    %26 = arith.mulf %17, %0 : vector<16x128xf32>
    %27 = vector.shape_cast %26 : vector<16x128xf32> to vector<1x16x128xf32>
    %cst_11 = arith.constant dense<0.000000e+00> : vector<1xf32>
    %28 = vector.multi_reduction <add>, %27, %cst_11 [1, 2] : vector<1x16x128xf32> to vector<1xf32>
    %29 = vector.shape_cast %28 : vector<1xf32> to vector<1x1x1xf32>
    %30 = vector.extract %29[0, 0, 0] : f32 from vector<1x1x1xf32>
    %31 = arith.subf %25, %30 : f32
    %32 = tpu.iota {dimensions = array<i32: 0>} : vector<8x128xi32>
    %33 = tpu.iota {dimensions = array<i32: 1>} : vector<8x128xi32>
    %c0_i32_12 = arith.constant 0 : i32
    %34 = vector.broadcast %c0_i32_12 : i32 to vector<8x128xi32>
    %35 = arith.cmpi eq, %32, %34 : vector<8x128xi32>
    %c0_i32_13 = arith.constant 0 : i32
    %36 = vector.broadcast %c0_i32_13 : i32 to vector<8x128xi32>
    %37 = arith.cmpi eq, %33, %36 : vector<8x128xi32>
    %38 = arith.andi %35, %37 : vector<8x128xi1>
    %cst_14 = arith.constant 0.000000e+00 : f32
    %39 = vector.broadcast %31 : f32 to vector<8x128xf32>
    %40 = vector.broadcast %cst_14 : f32 to vector<8x128xf32>
    %41 = arith.select %38, %39, %40 : vector<8x128xi1>, vector<8x128xf32>
    %c0_15 = arith.constant 0 : index
    %c0_16 = arith.constant 0 : index
    %42 = vector.load %arg4[%c0_15, %c0_16] : memref<8x128xf32, #tpu.memory_space<vmem>>, vector<8x128xf32>
    tpu.vector_store %arg4[%c0_15, %c0_16], %41 {strides = array<i32>} : memref<8x128xf32, #tpu.memory_space<vmem>>, vector<8x128xf32>,
    return
  }
  func.func @transform_0(%arg0: i32) -> (i32, i32) {
    %c0_i32 = arith.constant 0 : i32
    %c0_i32_0 = arith.constant 0 : i32
    return %arg0, %c0_i32 : i32, i32
  }
  func.func @transform_1(%arg0: i32) -> (i32, i32) {
    %c0_i32 = arith.constant 0 : i32
    %c0_i32_0 = arith.constant 0 : i32
    return %arg0, %c0_i32 : i32, i32
  }
  func.func @transform_2(%arg0: i32) -> (i32, i32) {
    %c0_i32 = arith.constant 0 : i32
    %c0_i32_0 = arith.constant 0 : i32
    return %arg0, %c0_i32 : i32, i32
  }
  func.func @transform_3(%arg0: i32) -> (i32, i32) {
    %c0_i32 = arith.constant 0 : i32
    %c0_i32_0 = arith.constant 0 : i32
    return %arg0, %c0_i32 : i32, i32
  }
}

</mosaic_0001>

<bundles_post_ra>
// kernel: label_smoothing.1
= control target key start
LH: loop header
LB: loop body
LE: loop exit
PB: predicated region body
PF: predicated region fallthrough
CT: control target
= control target key end

     0   :  { %v143_v2 = vmov 0   ;;  %s207_s0 = inlined_call_operand.vmem [shape: f32[16,128], index: 0, kind: input, shape index: {}]   ;;  %s208_s1 = inlined_call_operand.vmem [shape: s32[16,1], index: 1, kind: input, shape index: {}]   ;;  %s209_s2 = inlined_call_operand.hbm [shape: f32[16,128], index: 2, kind: output, shape index: {0}]   ;;  %s210_s3 = inlined_call_operand.vmem [shape: f32[8,128], index: 3, kind: output, shape index: {1}]  }
   0x1   :  { %v16_v0 = vld [vmem:[%s208_s1] sm:$0xff]  ;;  %v17_v1 = vld [vmem:[%s208_s1 + $0x8] sm:$0xff]  ;;  %117 = vset.pattern.permute.xlu0 %v143_v2  ;;  %118 = vset.pattern.permute.xlu1 %v143_v2 }
   0x2   :  { %vm20_vm0 = vcmp.ne.s32.totalorder %v16_v0, 0  ;;  %vm21_vm1 = vcmp.ne.s32.totalorder %v17_v1, 0 }
   0x3   :  { %9 = vsyncpa [#allocation3], 0  ;;  %23 = vperm.xlu0 %117, %v16_v0   ;;  %v35_v3 = vsel %vm20_vm0, 1, %v143_v2  ;;  %v36_v4 = vsel %vm21_vm1, 1, %v143_v2  ;;  %v144_v5 = vmov 0.0   ;;  %vm51_vm2 = vcmask 7168  }
   0x4   :  { %38 = vperm.xlu1 %118, %v35_v3   ;;  %v105_v6 = vsel %vm20_vm0, 1.0, %v144_v5  ;;  %v106_v7 = vsel %vm21_vm1, 1.0, %v144_v5  ;;  %v18_v11 = vlaneseq  ;;  %v145_v15 = vmov 0.0007936508   ;;  %v14_v21 = vld [vmem:[%s207_s0] sm:$0xff]  ;;  %v15_v23 = vld [vmem:[%s207_s0 + $0x8] sm:$0xff] }
   0x5   :  { %v52_v8 = vsel %vm51_vm2, %v105_v6, 0.0  ;;  %v53_v9 = vsel %vm51_vm2, %v106_v7, 0.0  ;;  %s146_s19 = smov [#allocation2]  }
   0x6   :  { %v54_v10 = vadd.f32 %v53_v9, %v52_v8  ;;  %v175_v12 = vand.u32 127, %v18_v11  ;;  %s90_s0 = sshll.u32 %s146_s19, 4  ;;  %s91_s0 = int_to_ptr.vmem [resolvable:$true] %s90_s0 }
   0x7   :  { %26 = vperm.xlu0 %117, %v17_v1   ;;  %s119_s20 = scalar_lea.vmem %s91_s0, 256  ;;  %p124_p1 = scmp.lt.s32.totalorder %s91_s0, %s91_s0 }
   0x8   :  { %41 = vperm.xlu1 %118, %v36_v4   ;;  %vm32_vm3 = vcmp.eq.s32.totalorder %v175_v12, 0  ;;  %p120_p0 = scmp.ne.s32.totalorder %s91_s0, %s119_s20  ;;  %p125_p2 = scmp.lt.s32.totalorder %s119_s20, %s119_s20 }
   0xa   :  { %p126_p3 = por %p125_p2, %p124_p1 }
   0xc   :  { %p127_p4 = pnand %p126_p3, %p120_p0 }
  0x26   :  { %55 = vadd.xlane.f32.xlu0 %v54_v10 }
  0x82   :  { %v24_v13 = vpop.permute.xlu0 %23 }
  0x83   :  { %vm28_vm4 = vcmp.eq.s32.totalorder %v175_v12, %v24_v13  ;;  %v39_v14 = vpop.permute.xlu1 %38 }
  0x84   :  { %v30_v16 = vsel %vm28_vm4, 0.9, %v145_v15  ;;  %vm43_vm5 = vcmp.eq.s32.totalorder %v39_v14, 1 }
  0x85   :  { %v33_v17 = vsel %vm32_vm3, 0.0, %v30_v16 }
  0x86   :  { %v45_v18 = vsel %vm43_vm5, %v33_v17, 0.0  ;;  %v27_v19 = vpop.permute.xlu0 %26 }
  0x87   :  { %47 = vst [vmem:[#allocation2] sm:$0xff] %v45_v18  ;;  %vm29_vm6 = vcmp.eq.s32.totalorder %v175_v12, %v27_v19  ;;  %v42_v20 = vpop.permute.xlu1 %41  ;;  %v65_v26 = vmul.f32 %v45_v18, %v14_v21 }
  0x88   :  { %v31_v22 = vsel %vm29_vm6, 0.9, %v145_v15  ;;  %vm44_vm7 = vcmp.eq.s32.totalorder %v42_v20, 1 }
  0x89   :  { %v34_v24 = vsel %vm32_vm3, 0.0, %v31_v22 }
  0x8a   :  { %v46_v25 = vsel %vm44_vm7, %v34_v24, 0.0 }
  0x8b   :  { %48 = vst [vmem:[#allocation2 + $0x8] sm:$0xff] %v46_v25  ;;  %v66_v27 = vmul.f32 %v46_v25, %v15_v23 }
  0x8d   :  { %v67_v28 = vadd.f32 %v66_v27, %v65_v26 }
  0x8f   :  { %68 = vadd.xlane.f32.xlu1 %v67_v28 }
  0xb3   :  { %v56_v29 = vpop.xlane.xlu0 %55 }
  0xb4   :  { %v57_v30 = vrot.slane %v56_v29, 4 }
  0xb6   :  { %v58_v31 = vadd.f32 %v57_v30, %v56_v29 }
  0xb8   :  { %v59_v32 = vrot.slane %v58_v31, 2 }
  0xba   :  { %v60_v33 = vadd.f32 %v59_v32, %v58_v31 }
  0xbc   :  { %v61_v34 = vrot.slane %v60_v33, 1 }
  0xbe   :  { %v62_v35 = vadd.f32 %v61_v34, %v60_v33 }
  0xc0   :  { %107 = vpush %v62_v35 }
  0xc1   :  { %130 = shalt.err (!%p127_p4)
}
  0xc2   :  { %s131_s23 = scalar_lea.hbm %s209_s2, 256 }
  0xc3   :  { %p132_p5 = scmp.ne.s32.totalorder %s209_s2, %s131_s23  ;;  %p135_p6 = scmp.lt.u32.totalorder %s131_s23, %s209_s2 }
  0xc5   :  { %p137_p7 = pnand %p135_p6, %p132_p5 }
  0xc7   :  { %140 = shalt.err (!%p137_p7)
}
  0xc8   :  { %s147_s28 = smov 128   ;;  %s148_s29 = smov 8   ;;  %v79_v43 = vshrl.u32 %v18_v11, 7 }
  0xc9   :  { %96 = dma.vmem_to_hbm [thread:$0]  %s91_s0, 256, %s209_s2, [#allocation3], %s147_s28, %s147_s28, %s148_s29  }
  0xca   :  { %vm80_vm8 = vcmp.eq.s32.totalorder %v79_v43, 0 }
  0xcb   :  { %vm81_vm9 = vmand %vm80_vm8, %vm32_vm3 }
  0xf1   :  { %s108_s5 = spop %107 }
  0xf2   :  { %s64_s6 = smul.f32 -0.8087112, %s108_s5 }
 0x11c   :  { %v69_v36 = vpop.xlane.xlu1 %68 }
 0x11d   :  { %v70_v37 = vrot.slane %v69_v36, 4 }
 0x11f   :  { %v71_v38 = vadd.f32 %v70_v37, %v69_v36 }
 0x121   :  { %v72_v39 = vrot.slane %v71_v38, 2 }
 0x123   :  { %v73_v40 = vadd.f32 %v72_v39, %v71_v38 }
 0x125   :  { %v74_v41 = vrot.slane %v73_v40, 1 }
 0x127   :  { %v75_v42 = vadd.f32 %v74_v41, %v73_v40 }
 0x129   :  { %109 = vpush %v75_v42 }
 0x15a   :  { %s110_s7 = spop %109 }
 0x15b   :  { %s77_s8 = ssub.f32 %s64_s6, %s110_s7 }
 0x15d   :  { %v82_v44 = vstv %s77_s8 }
 0x15e   :  { %v83_v45 = vsel %vm81_vm9, %v82_v44, 0.0 }
 0x15f   :  { %84 = vst [vmem:[%s210_s3] sm:$0xff] %v83_v45 }
 0x160   :  { %141 = dma.done.wait [#allocation3], 256  }
 0x161   :  { %142 = vsyncadd [#allocation3], 4294967040 }
 0x162   :  { %104 = vsyncpa [#allocation3], 1 }

</bundles_post_ra>
